<compile_context>
chip_gen: v5e
topology: v5e:2x2
jax: 0.10.0
libtpu: 0.0.40
codegen_flags: <defaults>
</compile_context>

<pallas_src>
import functools

import jax
import jax.numpy as jnp
import numpy as np
from jax import lax
from jax.experimental import pallas as pl
from jax.experimental.pallas import tpu as pltpu


def _round_up(x, m):
    return (x + m - 1) // m * m


def _largest_divisor_tile(dim, candidates=(512, 256, 128)):
    for c in candidates:
        if dim % c == 0:
            return c
    return dim


# ---------------------------------------------------------------------------
# Pallas kernel: tiled matmul + bias + ReLU (BN scale pre-folded into weights).
# Grid = (M_tiles, pair, N_tiles, K_tiles); K is the innermost reduction axis.
# ---------------------------------------------------------------------------
def _cba_matmul_kernel(x_ref, w_ref, b_ref, o_ref, acc_ref):
    # x_ref: (TM, TK) bf16   w_ref: (TK, TN) bf16
    # b_ref: (1, TN)  f32    o_ref: (TM, TN) f32   acc_ref: (TM, TN) f32
    @pl.when(pl.program_id(3) == 0)
    def _init():
        acc_ref[...] = jnp.zeros_like(acc_ref)

    acc_ref[...] += jnp.dot(x_ref[...], w_ref[...],
                            preferred_element_type=jnp.float32)

    @pl.when(pl.program_id(3) == pl.num_programs(3) - 1)
    def _finalize():
        o_ref[...] = jnp.maximum(acc_ref[...] + b_ref[...], 0.0).astype(o_ref.dtype)


def _fused_cba_matmul(x_all, w_all, b_all, *, tm, tn, tk):
    """x_all: (P, Mp, Kp) bf16, w_all: (P, Kp, Np) bf16, b_all: (P, 1, Np) f32."""
    P, Mp, Kp = x_all.shape
    Np = w_all.shape[-1]
    grid = (Mp // tm, P, Np // tn, Kp // tk)

    flops = 2 * P * Mp * Kp * Np
    bytes_accessed = (x_all.size * 2 + w_all.size * 2 + b_all.size * 4
                      + P * Mp * Np * 4)

    return pl.pallas_call(
        _cba_matmul_kernel,
        out_shape=jax.ShapeDtypeStruct((P, Mp, Np), jnp.float32),
        grid=grid,
        in_specs=[
            pl.BlockSpec((None, tm, tk), lambda i, p, j, k: (p, i, k)),
            pl.BlockSpec((None, tk, tn), lambda i, p, j, k: (p, k, j)),
            pl.BlockSpec((None, 1, tn), lambda i, p, j, k: (p, 0, j)),
        ],
        out_specs=pl.BlockSpec((None, tm, tn), lambda i, p, j, k: (p, i, j)),
        scratch_shapes=[pltpu.VMEM((tm, tn), jnp.float32)],
        compiler_params=pltpu.CompilerParams(
            dimension_semantics=("parallel", "parallel", "parallel", "arbitrary"),
            vmem_limit_bytes=32 * 1024 * 1024),
        cost_estimate=pl.CostEstimate(flops=flops, transcendentals=0,
                                      bytes_accessed=bytes_accessed),
    )(x_all, w_all, b_all)


# ---------------------------------------------------------------------------
# JAX glue: im2col, weight/BN folding, padding, final NCHW reassembly.
# ---------------------------------------------------------------------------
def _im2col(x_nchw, k=3, s=2, p=1):
    """x: (bs, c, H, W) -> (bs*Ho*Wo, c*k*k) with (c, kh, kw) ordering along K."""
    # Note: for large resolutions this materialized im2col could be replaced by an
    # in-kernel 9-tap accumulation to avoid the 9x HBM expansion.
    bs, c, H, W = x_nchw.shape
    xp = jnp.pad(x_nchw, ((0, 0), (0, 0), (p, p), (p, p)))
    Ho = (H + 2 * p - k) // s + 1
    Wo = (W + 2 * p - k) // s + 1
    taps = []
    for kh in range(k):
        for kw in range(k):
            taps.append(xp[:, :, kh:kh + s * Ho:s, kw:kw + s * Wo:s])  # (bs,c,Ho,Wo)
    patches = jnp.stack(taps, axis=2)                 # (bs, c, k*k, Ho, Wo)
    patches = patches.transpose(0, 3, 4, 1, 2)        # (bs, Ho, Wo, c, k*k)
    return patches.reshape(bs * Ho * Wo, c * k * k), Ho, Wo


def wconv_forward(x, conv_w, bn_gamma, bn_beta, bn_mean, bn_var, *, stride=2, eps=1e-5):
    """x: (bs, in_c, h, w) f32 NCHW.  conv_w: (4, out_c, in_c, 3, 3)."""
    bs, in_c, h, w = x.shape
    out_c = conv_w.shape[1]
    K = in_c * 9

    # Only two distinct activations: channel flips are folded into the weights.
    x_bf16 = x.astype(jnp.bfloat16)
    x_even = x_bf16[:, :, 0::2, 0::2]
    x_odd = x_bf16[:, :, 1::2, 1::2]

    col_even, Ho, Wo = _im2col(x_even, k=3, s=stride, p=1)
    col_odd, _, _ = _im2col(x_odd, k=3, s=stride, p=1)
    M = bs * Ho * Wo

    # Fold BatchNorm (inference) into scale/bias; fold channel flips into weights.
    scale = (bn_gamma / jnp.sqrt(bn_var + eps)).astype(jnp.float32)      # (4, out_c)
    bias = (bn_beta - bn_mean * scale).astype(jnp.float32)               # (4, out_c)

    w_eff = jnp.stack([conv_w[0],
                       jnp.flip(conv_w[1], axis=1),   # branch 2: channel flip folded
                       conv_w[2],
                       jnp.flip(conv_w[3], axis=1)],  # branch 4: channel flip folded
                      axis=0).astype(jnp.float32)
    # (4, out_c, in_c, 3, 3) -> (4, in_c*9, out_c), (c, kh, kw) ordering; fold BN scale.
    w_mat = w_eff.transpose(0, 2, 3, 4, 1).reshape(4, K, out_c) * scale[:, None, :]

    # Fuse branch pairs along N: pair 0 = [y1 | y2], pair 1 = [y3 | y4].
    two_oc = 2 * out_c
    w_pair = jnp.stack([jnp.concatenate([w_mat[0], w_mat[1]], axis=-1),
                        jnp.concatenate([w_mat[2], w_mat[3]], axis=-1)], axis=0)  # (2,K,2oc)
    b_pair = jnp.stack([jnp.concatenate([bias[0], bias[1]], axis=-1),
                        jnp.concatenate([bias[2], bias[3]], axis=-1)], axis=0)    # (2,2oc)

    # Pad to MXU/vreg-friendly shapes (K, N -> multiples of 128; M -> tile multiple).
    tm = min(256, _round_up(M, 16))
    Mp = _round_up(M, tm)
    Kp = _round_up(K, 128)
    Np = _round_up(two_oc, 128)
    tk = _largest_divisor_tile(Kp)
    tn = _largest_divisor_tile(Np, candidates=(256, 128))

    x_all = jnp.stack([col_even, col_odd], axis=0)                        # (2, M, K) bf16
    x_all = jnp.pad(x_all, ((0, 0), (0, Mp - M), (0, Kp - K)))
    w_all = jnp.pad(w_pair, ((0, 0), (0, Kp - K), (0, Np - two_oc))).astype(jnp.bfloat16)
    b_all = jnp.pad(b_pair, ((0, 0), (0, Np - two_oc)))[:, None, :]       # (2, 1, Np) f32

    y_all = _fused_cba_matmul(x_all, w_all, b_all, tm=tm, tn=tn, tk=tk)   # (2, Mp, Np)

    # Slice padding off and do a single reshape/transpose back to the NCHW
    # concat order [y1, y2, y3, y4] along channels.
    y = y_all[:, :M, :two_oc].reshape(2, bs, Ho, Wo, two_oc)
    y = y.transpose(1, 0, 4, 2, 3).reshape(bs, 4 * out_c, Ho, Wo)
    return y


def _reference_forward(x, conv_w, bn_gamma, bn_beta, bn_mean, bn_var, *, stride=2, eps=1e-5):
    x1 = x[:, :, 0::2, 0::2]
    x2 = jnp.flip(x1, axis=1)
    x3 = x[:, :, 1::2, 1::2]
    x4 = jnp.flip(x3, axis=1)
    outs = []
    for i, xb in enumerate((x1, x2, x3, x4)):
        y = lax.conv_general_dilated(
            xb, conv_w[i], window_strides=(stride, stride),
            padding=((1, 1), (1, 1)),
            dimension_numbers=("NCHW", "OIHW", "NCHW"))
        s = (bn_gamma[i] / jnp.sqrt(bn_var[i] + eps)).reshape(1, -1, 1, 1)
        b = (bn_beta[i] - bn_mean[i] * bn_gamma[i] / jnp.sqrt(bn_var[i] + eps)).reshape(1, -1, 1, 1)
        outs.append(jnp.maximum(y * s + b, 0.0))
    return jnp.concatenate(outs, axis=1)


if __name__ == "__main__":
    bs, in_c, out_c, h, w = 2, 4, 8, 16, 16
    stride = 2  # WConv default

    key = jax.random.PRNGKey(0)
    kx, kw, kg, kb, km, kv = jax.random.split(key, 6)

    x = jax.random.normal(kx, (bs, in_c, h, w), dtype=jnp.float32)

    fan_in = in_c * 9
    conv_w = jax.random.normal(kw, (4, out_c, in_c, 3, 3), dtype=jnp.float32) / np.sqrt(fan_in)
    bn_gamma = jax.random.uniform(kg, (4, out_c), minval=0.5, maxval=1.5, dtype=jnp.float32)
    bn_beta = 0.1 * jax.random.normal(kb, (4, out_c), dtype=jnp.float32)
    bn_mean = 0.1 * jax.random.normal(km, (4, out_c), dtype=jnp.float32)
    bn_var = jax.random.uniform(kv, (4, out_c), minval=0.5, maxval=1.5, dtype=jnp.float32)

    fwd = jax.jit(functools.partial(wconv_forward, stride=stride))
    out = jax.block_until_ready(fwd(x, conv_w, bn_gamma, bn_beta, bn_mean, bn_var))

    ref = _reference_forward(x, conv_w, bn_gamma, bn_beta, bn_mean, bn_var, stride=stride)
    # bf16 MXU inputs with f32 accumulation -> loosened tolerance vs. f32 reference.
    np.testing.assert_allclose(np.asarray(out), np.asarray(ref), rtol=5e-2, atol=5e-2)
    assert out.shape == (bs, 4 * out_c, h // 4, w // 4), out.shape

    print("KERNEL_OK")
</pallas_src>

<mosaic_0001>
module attributes {stable_mosaic.version = 11 : i64} {
  func.func @_cba_matmul_kernel(%arg0: i32, %arg1: i32, %arg2: i32, %arg3: i32, %arg4: memref<1x32x128xbf16, #tpu.memory_space<vmem>>, %arg5: memref<1x128x128xbf16, #tpu.memory_space<vmem>>, %arg6: memref<1x1x128xf32, #tpu.memory_space<vmem>>, %arg7: memref<1x32x128xf32, #tpu.memory_space<vmem>>, %arg8: memref<32x128xf32, #tpu.memory_space<vmem>>) attributes {dimension_semantics = [#tpu.dimension_semantics<parallel>, #tpu.dimension_semantics<parallel>, #tpu.dimension_semantics<parallel>, #tpu.dimension_semantics<arbitrary>], iteration_bounds = array<i64: 1, 2, 1, 1>, scalar_prefetch = 0 : i64, scratch_operands = 1 : i64, tpu.core_type = #tpu.core_type<tc>, window_params = [{transform_indices = @transform_0, window_bounds = array<i64: 1, 32, 128>}, {transform_indices = @transform_1, window_bounds = array<i64: 1, 128, 128>}, {transform_indices = @transform_2, window_bounds = array<i64: 1, 1, 128>}, {transform_indices = @transform_3, window_bounds = array<i64: 1, 32, 128>}]} {
    %c0_i32 = arith.constant 0 : i32
    %0 = arith.cmpi eq, %arg3, %c0_i32 : i32
    %1 = arith.extui %0 : i1 to i32
    %c0_i32_0 = arith.constant 0 : i32
    %2 = arith.cmpi ne, %1, %c0_i32_0 : i32
    scf.if %2 {
      %cst_12 = arith.constant 0.000000e+00 : f32
      %14 = vector.broadcast %cst_12 : f32 to vector<32x128xf32>
      %c0_13 = arith.constant 0 : index
      %c0_14 = arith.constant 0 : index
      %15 = vector.load %arg8[%c0_13, %c0_14] : memref<32x128xf32, #tpu.memory_space<vmem>>, vector<32x128xf32>
      tpu.vector_store %arg8[%c0_13, %c0_14], %14 {strides = array<i32>} : memref<32x128xf32, #tpu.memory_space<vmem>>, vector<32x128xf32>,
    } else {
    }
    %c0 = arith.constant 0 : index
    %c0_1 = arith.constant 0 : index
    %3 = vector.load %arg8[%c0, %c0_1] : memref<32x128xf32, #tpu.memory_space<vmem>>, vector<32x128xf32>
    %c0_2 = arith.constant 0 : index
    %c0_3 = arith.constant 0 : index
    %c0_4 = arith.constant 0 : index
    %4 = vector.load %arg4[%c0_2, %c0_3, %c0_4] : memref<1x32x128xbf16, #tpu.memory_space<vmem>>, vector<1x32x128xbf16>
    %5 = vector.shape_cast %4 : vector<1x32x128xbf16> to vector<32x128xbf16>
    %c0_5 = arith.constant 0 : index
    %c0_6 = arith.constant 0 : index
    %c0_7 = arith.constant 0 : index
    %6 = vector.load %arg5[%c0_5, %c0_6, %c0_7] : memref<1x128x128xbf16, #tpu.memory_space<vmem>>, vector<1x128x128xbf16>
    %7 = vector.shape_cast %6 : vector<1x128x128xbf16> to vector<128x128xbf16>
    %cst = arith.constant dense<0.000000e+00> : vector<32x128xf32>
    %8 = tpu.matmul %5, %7, %cst {dimension_numbers = #tpu.dot_dimension_numbers<[1], [0], [0], [1], [0, 0, 1, 1], [], []>} : vector<32x128xbf16>, vector<128x128xbf16>, vector<32x128xf32> -> vector<32x128xf32>
    %9 = arith.addf %3, %8 : vector<32x128xf32>
    %c0_8 = arith.constant 0 : index
    %c0_9 = arith.constant 0 : index
    %10 = vector.load %arg8[%c0_8, %c0_9] : memref<32x128xf32, #tpu.memory_space<vmem>>, vector<32x128xf32>
    tpu.vector_store %arg8[%c0_8, %c0_9], %9 {strides = array<i32>} : memref<32x128xf32, #tpu.memory_space<vmem>>, vector<32x128xf32>,
    %c0_i32_10 = arith.constant 0 : i32
    %11 = arith.cmpi eq, %arg3, %c0_i32_10 : i32
    %12 = arith.extui %11 : i1 to i32
    %c0_i32_11 = arith.constant 0 : i32
    %13 = arith.cmpi ne, %12, %c0_i32_11 : i32
    scf.if %13 {
      %c0_12 = arith.constant 0 : index
      %c0_13 = arith.constant 0 : index
      %14 = vector.load %arg8[%c0_12, %c0_13] : memref<32x128xf32, #tpu.memory_space<vmem>>, vector<32x128xf32>
      %c0_14 = arith.constant 0 : index
      %c0_15 = arith.constant 0 : index
      %c0_16 = arith.constant 0 : index
      %15 = vector.load %arg6[%c0_14, %c0_15, %c0_16] : memref<1x1x128xf32, #tpu.memory_space<vmem>>, vector<1x1x128xf32>
      %16 = vector.shape_cast %15 : vector<1x1x128xf32> to vector<1x128xf32>
      %17 = vector.broadcast %16 : vector<1x128xf32> to vector<32x128xf32>
      %18 = arith.addf %14, %17 : vector<32x128xf32>
      %cst_17 = arith.constant 0.000000e+00 : f32
      %19 = vector.broadcast %cst_17 : f32 to vector<32x128xf32>
      %20 = arith.maximumf %18, %19 : vector<32x128xf32>
      %c0_18 = arith.constant 0 : index
      %c0_19 = arith.constant 0 : index
      %c0_20 = arith.constant 0 : index
      %21 = vector.load %arg7[%c0_18, %c0_19, %c0_20] : memref<1x32x128xf32, #tpu.memory_space<vmem>>, vector<1x32x128xf32>
      %22 = vector.shape_cast %21 : vector<1x32x128xf32> to vector<32x128xf32>
      %23 = vector.shape_cast %20 : vector<32x128xf32> to vector<1x32x128xf32>
      tpu.vector_store %arg7[%c0_18, %c0_19, %c0_20], %23 {strides = array<i32>} : memref<1x32x128xf32, #tpu.memory_space<vmem>>, vector<1x32x128xf32>,
    } else {
    }
    return
  }
  func.func @transform_0(%arg0: i32, %arg1: i32, %arg2: i32, %arg3: i32) -> (i32, i32, i32) {
    %c0_i32 = arith.constant 0 : i32
    return %arg1, %arg0, %arg3 : i32, i32, i32
  }
  func.func @transform_1(%arg0: i32, %arg1: i32, %arg2: i32, %arg3: i32) -> (i32, i32, i32) {
    %c0_i32 = arith.constant 0 : i32
    return %arg1, %arg3, %arg2 : i32, i32, i32
  }
  func.func @transform_2(%arg0: i32, %arg1: i32, %arg2: i32, %arg3: i32) -> (i32, i32, i32) {
    %c0_i32 = arith.constant 0 : i32
    %c0_i32_0 = arith.constant 0 : i32
    return %arg1, %c0_i32, %arg2 : i32, i32, i32
  }
  func.func @transform_3(%arg0: i32, %arg1: i32, %arg2: i32, %arg3: i32) -> (i32, i32, i32) {
    %c0_i32 = arith.constant 0 : i32
    return %arg1, %arg0, %arg2 : i32, i32, i32
  }
}

</mosaic_0001>

<bundles_post_ra>
// kernel: wconv_forward.1
= control target key start
LH: loop header
LB: loop body
LE: loop exit
PB: predicated region body
PF: predicated region fallthrough
CT: control target
= control target key end

     0   :  { %s739_s12 = smov 0   ;;  %s741_s13 = smov 0   ;;  %s784_s0 = inlined_call_operand.vmem [shape: bf16[2,32,128], index: 0, kind: input, shape index: {}]   ;;  %s785_s1 = inlined_call_operand.vmem [shape: bf16[2,128,128], index: 1, kind: input, shape index: {}]   ;;  %s786_s2 = inlined_call_operand.vmem [shape: f32[2,1,128], index: 2, kind: input, shape index: {}]   ;;  %s787_s3 = inlined_call_operand.vmem [shape: f32[2,32,128], index: 3, kind: output, shape index: {}]  }
   0x1   :  { %s743_s14 = smov 0  }
   0x2 LB: > { %s35_s15 = sadd.s32 1, %s713_s13  ;;  %p600_p0 = scmp.ge.s32.totalorder %s717_s14, 1  ;;  %s717_s14 = sphi %s743_s14, %s13_s14   ;;  %s713_s13 = sphi %s741_s13, %s789_s13   ;;  %s709_s12 = sphi %s739_s12, %s788_s12  }
   0x3   : > { %p37_p1 = scmp.ge.s32.totalorder %s35_s15, 2  ;;  %p214_p2 = scmp.lt.s32.totalorder %s717_s14, 3 }
   0x5   : > { %s791_s15 = smov (%p37_p1, %s35_s15), 0  ;;  %p215_p3 = pnand %p600_p0, %p214_p2 }
   0x6   : > { %p271_p4 = scmp.lt.s32.totalorder (!%p215_p3), %s709_s12, 1 }
   0x7   : > { %218 = sbr.rel (%p215_p3) target bundleno = 187 (0xbb), region = 32 }
   0xc   : > { %s793_s12 = smov (!%p271_p4, %s709_s12), 1 }
   0xd   : > { %s650_s16 = sshll.u32 %s793_s12, 6  ;;  %s301_s22 = scalar_lea.vmem %s786_s2, %s793_s12 }
   0xe   : > { %s294_s19 = scalar_lea.vmem %s785_s1, %s650_s16  ;;  %s649_s23 = sshll.u32 %s793_s12, 4  ;;  %v694_v10 = vld [vmem:[%s301_s22] ss:$0 sm:$0xff] }
   0xf   : > { %v661_v0 = vld [vmem:[%s294_s19 + $0x38] sm:$0xff]  ;;  %v660_v1 = vld [vmem:[%s294_s19 + $0x30] sm:$0xff]  ;;  %v659_v2 = vld [vmem:[%s294_s19 + $0x28] sm:$0xff]  ;;  %s281_s26 = scalar_lea.vmem %s784_s0, %s649_s23  ;;  %s651_s27 = sshll.u32 %s793_s12, 5 }
  0x10   : > { %407 = vmatpush.bf16.msra.mxu0 %v661_v0  ;;  %662 = vmatpush.bf16.msra.mxu1 %v661_v0  ;;  %v658_v3 = vld [vmem:[%s294_s19 + $0x20] sm:$0xff]  ;;  %v657_v4 = vld [vmem:[%s294_s19 + $0x18] sm:$0xff]  ;;  %v656_v5 = vld [vmem:[%s294_s19 + $0x10] sm:$0xff]  ;;  %s313_s30 = scalar_lea.vmem %s787_s3, %s651_s27 }
  0x11   : > { %v655_v6 = vld [vmem:[%s294_s19 + $0x8] sm:$0xff]  ;;  %v654_v7 = vld [vmem:[%s294_s19] sm:$0xff] }
  0x12   : > { %v652_v8 = vld [vmem:[%s281_s26] sm:$0xff]  ;;  %v653_v9 = vld [vmem:[%s281_s26 + $0x8] sm:$0xff] }
  0x14   : > { %408 = vmatpush.bf16.msra.mxu0 %v660_v1  ;;  %663 = vmatpush.bf16.msra.mxu1 %v660_v1 }
  0x18   : > { %409 = vmatpush.bf16.msra.mxu0 %v659_v2  ;;  %664 = vmatpush.bf16.msra.mxu1 %v659_v2 }
  0x1c   : > { %410 = vmatpush.bf16.msra.mxu0 %v658_v3  ;;  %665 = vmatpush.bf16.msra.mxu1 %v658_v3 }
  0x20   : > { %411 = vmatpush.bf16.msra.mxu0 %v657_v4  ;;  %666 = vmatpush.bf16.msra.mxu1 %v657_v4 }
  0x24   : > { %412 = vmatpush.bf16.msra.mxu0 %v656_v5  ;;  %667 = vmatpush.bf16.msra.mxu1 %v656_v5 }
  0x28   : > { %413 = vmatpush.bf16.msra.mxu0 %v655_v6  ;;  %668 = vmatpush.bf16.msra.mxu1 %v655_v6 }
  0x2c   : > { %414 = vmatpush.bf16.msra.mxu0 %v654_v7  ;;  %669 = vmatpush.bf16.msra.mxu1 %v654_v7 }
  0x2f   : > { %415 = vmatmul.bf16.vlgmr.msra.gmra.mxu0 %v652_v8  ;;  %420 = vmatmul.bf16.vlgmr.msra.gmra.mxu1 %v653_v9 }
  0xac   : > { %v416_v11 = vpop.f32.mrf.mxu0  ;;  %v421_v12 = vpop.f32.mrf.mxu1 }
  0xad   : > { %v445_v13 = vadd.f32 %v694_v10, %v416_v11  ;;  %v447_v14 = vadd.f32 %v694_v10, %v421_v12 }
  0xaf   : > { %v449_v15 = vmax.f32 %v445_v13, 0.0  ;;  %v451_v16 = vmax.f32 %v447_v14, 0.0 }
  0xb1   : > { %453 = vst [vmem:[%s313_s30] sm:$0xff] %v449_v15 }
  0xb2   : > { %455 = vst [vmem:[%s313_s30 + $0x10] sm:$0xff] %v451_v16 }
  0xb4   : > { %v418_v17 = vpop.f32.mrf.mxu0  ;;  %v423_v18 = vpop.f32.mrf.mxu1 }
  0xb5   : > { %v446_v19 = vadd.f32 %v694_v10, %v418_v17  ;;  %v448_v20 = vadd.f32 %v694_v10, %v423_v18 }
  0xb7   : > { %v450_v21 = vmax.f32 %v446_v19, 0.0  ;;  %v452_v22 = vmax.f32 %v448_v20, 0.0 }
  0xb9   : > { %454 = vst [vmem:[%s313_s30 + $0x8] sm:$0xff] %v450_v21 }
  0xba   : > { %456 = vst [vmem:[%s313_s30 + $0x18] sm:$0xff] %v452_v22 }
  0xbb PF: > { %s13_s14 = sadd.s32 1, %s717_s14   ;;  %s788_s12 = smov %s713_s13 }
  0xbc   : > { %p10_p5 = scmp.ge.s32.totalorder %s13_s14, 4   ;;  %s789_s13 = smov %s791_s15 }
  0xbe   :  { %12 = sbr.rel (!%p10_p5) target bundleno = 2 (0x2), region = 76 }

</bundles_post_ra>
